<compile_context>
chip_gen: v7x
topology: tpu7x:2x2x1
jax: 0.10.0
libtpu: 0.0.40
codegen_flags: <defaults>
</compile_context>

<pallas_src>
import jax
import jax.numpy as jnp
from jax.experimental import pallas as pl
from jax.experimental.pallas import tpu as pltpu

HIDDEN = 32
NUM_TYPES = 24
VOCAB = 100
SEQ = 8
BATCH = 2

LANES = 128       # packed weight-slab / output lane width
SUBLANES = 8      # native f32 sublane count

# packed-output column layout
COL_PAIR = 0
COL_LEFT = 1
COL_RIGHT = 2
COL_TYPE = 3      # cols 3 .. 3 + NUM_TYPES - 1


# ----------------------------- Pallas kernel ------------------------------ #
def _rank_head_kernel(pq_ref, plc_ref, prc_ref,     # pooled streams (Bp, H)
                      pw_ref, pb_ref,               # encoder tail (H,H), (1,H)
                      wq_ref, wl_ref, wr_ref,       # packed weight slabs (H, 128)
                      bias_ref,                     # packed bias row (1, 128)
                      out_ref):                     # packed output (Bp, 128)
    pw = pw_ref[...]
    pb = pb_ref[...]

    # fused encoder tail: CLS = tanh(pooled @ pool_w + pool_b) for q / l / r
    q = jnp.tanh(jnp.dot(pq_ref[...], pw, preferred_element_type=jnp.float32) + pb)
    lc = jnp.tanh(jnp.dot(plc_ref[...], pw, preferred_element_type=jnp.float32) + pb)
    rc = jnp.tanh(jnp.dot(prc_ref[...], pw, preferred_element_type=jnp.float32) + pb)

    # one lane-dense accumulator carrying all three linear heads + biases
    acc = (jnp.dot(q, wq_ref[...], preferred_element_type=jnp.float32)
           + jnp.dot(lc, wl_ref[...], preferred_element_type=jnp.float32)
           + jnp.dot(rc, wr_ref[...], preferred_element_type=jnp.float32)
           + bias_ref[...])                              # (Bp, 128)

    left_logits = acc[:, COL_LEFT:COL_LEFT + 1]          # (Bp, 1)
    right_logits = acc[:, COL_RIGHT:COL_RIGHT + 1]       # (Bp, 1)
    pair = jax.nn.sigmoid(left_logits - right_logits)    # (Bp, 1)

    lane = jax.lax.broadcasted_iota(jnp.int32, acc.shape, 1)
    out_ref[...] = jnp.where(lane == COL_PAIR, pair, acc)


# --------------------------- wrapper / packing ----------------------------- #
def pack_head_params(params, encoder):
    """Packs the three linear heads into lane-dense (H, 128) slabs + bias row."""
    H = HIDDEN
    wq = jnp.zeros((H, LANES), jnp.float32)
    wq = wq.at[:, COL_LEFT].set(params["left_w"][:H, 0])       # query half of left_fc
    wq = wq.at[:, COL_RIGHT].set(params["right_w"][:H, 0])     # query half of right_fc
    wq = wq.at[:, COL_TYPE:COL_TYPE + NUM_TYPES].set(params["type_w"])

    wl = jnp.zeros((H, LANES), jnp.float32)
    wl = wl.at[:, COL_LEFT].set(params["left_w"][H:, 0])       # candidate half of left_fc
    wr = jnp.zeros((H, LANES), jnp.float32)
    wr = wr.at[:, COL_RIGHT].set(params["right_w"][H:, 0])     # candidate half of right_fc

    bias = jnp.zeros((1, LANES), jnp.float32)
    bias = bias.at[0, COL_LEFT].set(params["left_b"][0, 0])
    bias = bias.at[0, COL_RIGHT].set(params["right_b"][0, 0])
    bias = bias.at[0, COL_TYPE:COL_TYPE + NUM_TYPES].set(params["type_b"][0])

    return wq, wl, wr, bias, encoder["pool_w"], encoder["pool_b"].reshape(1, H)


def type_pair_rank_head(pooled_q, pooled_l, pooled_r, packed):
    """Runs encoder tail + TypePairRank head in a single Pallas call."""
    wq, wl, wr, bias, pool_w, pool_b = packed
    B, _ = pooled_q.shape
    Bp = ((B + SUBLANES - 1) // SUBLANES) * SUBLANES   # pad batch to 8 sublanes
    pad = Bp - B

    def pad_batch(x):
        return jnp.pad(x, ((0, pad), (0, 0))) if pad else x

    args = (pad_batch(pooled_q), pad_batch(pooled_l), pad_batch(pooled_r),
            pool_w, pool_b, wq, wl, wr, bias)

    vmem = pl.BlockSpec(memory_space=pltpu.MemorySpace.VMEM)
    slab = pl.pallas_call(
        _rank_head_kernel,
        out_shape=jax.ShapeDtypeStruct((Bp, LANES), jnp.float32),
        in_specs=[vmem] * len(args),
        out_specs=vmem,
    )(*args)

    slab = slab[:B]
    pair_probs = slab[:, COL_PAIR:COL_PAIR + 1]
    left_logits = slab[:, COL_LEFT:COL_LEFT + 1]
    right_logits = slab[:, COL_RIGHT:COL_RIGHT + 1]
    type_out = slab[:, COL_TYPE:COL_TYPE + NUM_TYPES]
    return pair_probs, type_out, left_logits, right_logits


# ------------------------- deterministic parameters ------------------------ #
def init_params(key):
    ks = jax.random.split(key, 6)
    # nn.Linear weights: normal(0, 0.02); biases zero (per init_model_weights).
    params = {
        # stored as (in_features, out_features) = PyTorch weight transposed
        "left_w": 0.02 * jax.random.normal(ks[0], (2 * HIDDEN, 1), jnp.float32),
        "left_b": jnp.zeros((1, 1), jnp.float32),
        "right_w": 0.02 * jax.random.normal(ks[1], (2 * HIDDEN, 1), jnp.float32),
        "right_b": jnp.zeros((1, 1), jnp.float32),
        "type_w": 0.02 * jax.random.normal(ks[2], (HIDDEN, NUM_TYPES), jnp.float32),
        "type_b": jnp.zeros((1, NUM_TYPES), jnp.float32),
    }
    encoder = {
        # TODO(synk): the real sentence_encoder is external; this is a minimal
        # deterministic embedding + masked-mean-pool + tanh(Linear) stand-in.
        "emb": 0.02 * jax.random.normal(ks[3], (VOCAB, HIDDEN), jnp.float32),
        "pool_w": 0.02 * jax.random.normal(ks[4], (HIDDEN, HIDDEN), jnp.float32),
        "pool_b": jnp.zeros((HIDDEN,), jnp.float32),
    }
    return params, encoder


def masked_mean_pool(encoder, input_ids, masks, sentence_ids, position_ids):
    """Plain-JAX glue: embedding gather + masked mean pool (encoder front)."""
    del sentence_ids, position_ids
    emb = encoder["emb"][input_ids]                              # (B, S, H)
    m = masks.astype(jnp.float32)[..., None]                     # (B, S, 1)
    return (emb * m).sum(axis=1) / jnp.maximum(m.sum(axis=1), 1.0)


def type_pair_rank_forward(params, encoder,
                           query_input_ids, query_masks, query_sentence_ids, query_position_ids,
                           left_input_ids, left_masks, left_sentence_ids, left_position_ids,
                           right_input_ids, right_masks, right_sentence_ids, right_position_ids):
    # TODO(synk): embedding gather / mean-pool stays in plain JAX (the real
    # sentence_encoder is external); its linear+tanh tail is fused into the
    # Pallas kernel together with the ranking head.
    pooled_q = masked_mean_pool(encoder, query_input_ids, query_masks,
                                query_sentence_ids, query_position_ids)
    pooled_l = masked_mean_pool(encoder, left_input_ids, left_masks,
                                left_sentence_ids, left_position_ids)
    pooled_r = masked_mean_pool(encoder, right_input_ids, right_masks,
                                right_sentence_ids, right_position_ids)
    packed = pack_head_params(params, encoder)
    return type_pair_rank_head(pooled_q, pooled_l, pooled_r, packed)


# ---------------------------------- main ----------------------------------- #
if __name__ == "__main__":
    key = jax.random.PRNGKey(0)
    k_param, k_q, k_l, k_r = jax.random.split(key, 4)
    params, encoder = init_params(k_param)

    def make_inputs(k):
        ids = jax.random.randint(k, (BATCH, SEQ), 0, VOCAB, dtype=jnp.int32)
        masks = jnp.ones((BATCH, SEQ), jnp.int32)
        sent = jnp.zeros((BATCH, SEQ), jnp.int32)
        pos = jnp.tile(jnp.arange(SEQ, dtype=jnp.int32)[None, :], (BATCH, 1))
        return ids, masks, sent, pos

    q_in = make_inputs(k_q)
    l_in = make_inputs(k_l)
    r_in = make_inputs(k_r)

    fwd = jax.jit(type_pair_rank_forward)
    pair_probs, type_out, left_logits, right_logits = fwd(
        params, encoder, *q_in, *l_in, *r_in)
    jax.block_until_ready((pair_probs, type_out, left_logits, right_logits))

    # plain-JAX reference of the full forward (encoder tail + ranking head)
    def ref_cls(stream):
        pooled = masked_mean_pool(encoder, *stream)
        return jnp.tanh(pooled @ encoder["pool_w"] + encoder["pool_b"])

    q_cls, l_cls, r_cls = ref_cls(q_in), ref_cls(l_in), ref_cls(r_in)
    ref_ll = jnp.concatenate([q_cls, l_cls], -1) @ params["left_w"] + params["left_b"]
    ref_rl = jnp.concatenate([q_cls, r_cls], -1) @ params["right_w"] + params["right_b"]
    ref_pp = jax.nn.sigmoid(ref_ll - ref_rl)
    ref_ty = q_cls @ params["type_w"] + params["type_b"]

    assert pair_probs.shape == (BATCH, 1)
    assert type_out.shape == (BATCH, NUM_TYPES)
    assert left_logits.shape == (BATCH, 1)
    assert right_logits.shape == (BATCH, 1)
    assert jnp.allclose(pair_probs, ref_pp, atol=1e-5)
    assert jnp.allclose(type_out, ref_ty, atol=1e-5)
    assert jnp.allclose(left_logits, ref_ll, atol=1e-5)
    assert jnp.allclose(right_logits, ref_rl, atol=1e-5)

    print("KERNEL_OK")
</pallas_src>

<mosaic_0001>
module attributes {stable_mosaic.version = 11 : i64} {
  func.func @_rank_head_kernel(%arg0: memref<8x32xf32, #tpu.memory_space<vmem>>, %arg1: memref<8x32xf32, #tpu.memory_space<vmem>>, %arg2: memref<8x32xf32, #tpu.memory_space<vmem>>, %arg3: memref<32x32xf32, #tpu.memory_space<vmem>>, %arg4: memref<1x32xf32, #tpu.memory_space<vmem>>, %arg5: memref<32x128xf32, #tpu.memory_space<vmem>>, %arg6: memref<32x128xf32, #tpu.memory_space<vmem>>, %arg7: memref<32x128xf32, #tpu.memory_space<vmem>>, %arg8: memref<1x128xf32, #tpu.memory_space<vmem>>, %arg9: memref<8x128xf32, #tpu.memory_space<vmem>>) attributes {dimension_semantics = [], scalar_prefetch = 0 : i64, scratch_operands = 0 : i64, tpu.core_type = #tpu.core_type<tc>} {
    %c0 = arith.constant 0 : index
    %c0_0 = arith.constant 0 : index
    %0 = vector.load %arg3[%c0, %c0_0] : memref<32x32xf32, #tpu.memory_space<vmem>>, vector<32x32xf32>
    %c0_1 = arith.constant 0 : index
    %c0_2 = arith.constant 0 : index
    %1 = vector.load %arg4[%c0_1, %c0_2] : memref<1x32xf32, #tpu.memory_space<vmem>>, vector<1x32xf32>
    %c0_3 = arith.constant 0 : index
    %c0_4 = arith.constant 0 : index
    %2 = vector.load %arg0[%c0_3, %c0_4] : memref<8x32xf32, #tpu.memory_space<vmem>>, vector<8x32xf32>
    %cst = arith.constant dense<0.000000e+00> : vector<8x32xf32>
    %3 = tpu.matmul %2, %0, %cst {dimension_numbers = #tpu.dot_dimension_numbers<[1], [0], [0], [1], [0, 0, 1, 1], [], []>} : vector<8x32xf32>, vector<32x32xf32>, vector<8x32xf32> -> vector<8x32xf32>
    %4 = vector.broadcast %1 : vector<1x32xf32> to vector<8x32xf32>
    %5 = arith.addf %3, %4 : vector<8x32xf32>
    %6 = math.tanh %5 : vector<8x32xf32>
    %c0_5 = arith.constant 0 : index
    %c0_6 = arith.constant 0 : index
    %7 = vector.load %arg1[%c0_5, %c0_6] : memref<8x32xf32, #tpu.memory_space<vmem>>, vector<8x32xf32>
    %cst_7 = arith.constant dense<0.000000e+00> : vector<8x32xf32>
    %8 = tpu.matmul %7, %0, %cst_7 {dimension_numbers = #tpu.dot_dimension_numbers<[1], [0], [0], [1], [0, 0, 1, 1], [], []>} : vector<8x32xf32>, vector<32x32xf32>, vector<8x32xf32> -> vector<8x32xf32>
    %9 = vector.broadcast %1 : vector<1x32xf32> to vector<8x32xf32>
    %10 = arith.addf %8, %9 : vector<8x32xf32>
    %11 = math.tanh %10 : vector<8x32xf32>
    %c0_8 = arith.constant 0 : index
    %c0_9 = arith.constant 0 : index
    %12 = vector.load %arg2[%c0_8, %c0_9] : memref<8x32xf32, #tpu.memory_space<vmem>>, vector<8x32xf32>
    %cst_10 = arith.constant dense<0.000000e+00> : vector<8x32xf32>
    %13 = tpu.matmul %12, %0, %cst_10 {dimension_numbers = #tpu.dot_dimension_numbers<[1], [0], [0], [1], [0, 0, 1, 1], [], []>} : vector<8x32xf32>, vector<32x32xf32>, vector<8x32xf32> -> vector<8x32xf32>
    %14 = vector.broadcast %1 : vector<1x32xf32> to vector<8x32xf32>
    %15 = arith.addf %13, %14 : vector<8x32xf32>
    %16 = math.tanh %15 : vector<8x32xf32>
    %c0_11 = arith.constant 0 : index
    %c0_12 = arith.constant 0 : index
    %17 = vector.load %arg5[%c0_11, %c0_12] : memref<32x128xf32, #tpu.memory_space<vmem>>, vector<32x128xf32>
    %cst_13 = arith.constant dense<0.000000e+00> : vector<8x128xf32>
    %18 = tpu.matmul %6, %17, %cst_13 {dimension_numbers = #tpu.dot_dimension_numbers<[1], [0], [0], [1], [0, 0, 1, 1], [], []>} : vector<8x32xf32>, vector<32x128xf32>, vector<8x128xf32> -> vector<8x128xf32>
    %c0_14 = arith.constant 0 : index
    %c0_15 = arith.constant 0 : index
    %19 = vector.load %arg6[%c0_14, %c0_15] : memref<32x128xf32, #tpu.memory_space<vmem>>, vector<32x128xf32>
    %cst_16 = arith.constant dense<0.000000e+00> : vector<8x128xf32>
    %20 = tpu.matmul %11, %19, %cst_16 {dimension_numbers = #tpu.dot_dimension_numbers<[1], [0], [0], [1], [0, 0, 1, 1], [], []>} : vector<8x32xf32>, vector<32x128xf32>, vector<8x128xf32> -> vector<8x128xf32>
    %21 = arith.addf %18, %20 : vector<8x128xf32>
    %c0_17 = arith.constant 0 : index
    %c0_18 = arith.constant 0 : index
    %22 = vector.load %arg7[%c0_17, %c0_18] : memref<32x128xf32, #tpu.memory_space<vmem>>, vector<32x128xf32>
    %cst_19 = arith.constant dense<0.000000e+00> : vector<8x128xf32>
    %23 = tpu.matmul %16, %22, %cst_19 {dimension_numbers = #tpu.dot_dimension_numbers<[1], [0], [0], [1], [0, 0, 1, 1], [], []>} : vector<8x32xf32>, vector<32x128xf32>, vector<8x128xf32> -> vector<8x128xf32>
    %24 = arith.addf %21, %23 : vector<8x128xf32>
    %c0_20 = arith.constant 0 : index
    %c0_21 = arith.constant 0 : index
    %25 = vector.load %arg8[%c0_20, %c0_21] : memref<1x128xf32, #tpu.memory_space<vmem>>, vector<1x128xf32>
    %26 = vector.broadcast %25 : vector<1x128xf32> to vector<8x128xf32>
    %27 = arith.addf %24, %26 : vector<8x128xf32>
    %28 = vector.extract_strided_slice %27 {offsets = [0, 1], sizes = [8, 1], strides = [1, 1]} : vector<8x128xf32> to vector<8x1xf32>
    %29 = vector.extract_strided_slice %27 {offsets = [0, 2], sizes = [8, 1], strides = [1, 1]} : vector<8x128xf32> to vector<8x1xf32>
    %30 = arith.subf %28, %29 : vector<8x1xf32>
    %31 = arith.negf %30 : vector<8x1xf32>
    %32 = math.exp %31 : vector<8x1xf32>
    %cst_22 = arith.constant 1.000000e+00 : f32
    %33 = vector.broadcast %cst_22 : f32 to vector<8x1xf32>
    %34 = arith.addf %33, %32 : vector<8x1xf32>
    %35 = arith.divf %33, %34 : vector<8x1xf32>
    %36 = tpu.iota {dimensions = array<i32: 1>} : vector<8x128xi32>
    %c0_i32 = arith.constant 0 : i32
    %37 = vector.broadcast %c0_i32 : i32 to vector<8x128xi32>
    %38 = arith.cmpi eq, %36, %37 : vector<8x128xi32>
    %39 = vector.shape_cast %35 : vector<8x1xf32> to vector<8x1xf32>
    %40 = vector.broadcast %39 : vector<8x1xf32> to vector<8x128xf32>
    %41 = arith.select %38, %40, %27 : vector<8x128xi1>, vector<8x128xf32>
    %c0_23 = arith.constant 0 : index
    %c0_24 = arith.constant 0 : index
    %42 = vector.load %arg9[%c0_23, %c0_24] : memref<8x128xf32, #tpu.memory_space<vmem>>, vector<8x128xf32>
    tpu.vector_store %arg9[%c0_23, %c0_24], %41 {strides = array<i32>} : memref<8x128xf32, #tpu.memory_space<vmem>>, vector<8x128xf32>,
    return
  }
}

</mosaic_0001>

<bundles_post_ra>
// kernel: type_pair_rank_forward.1
= control target key start
LH: loop header
LB: loop body
LE: loop exit
PB: predicated region body
PF: predicated region fallthrough
CT: control target
= control target key end

     0   :  { %v691_v0 = vmov 0.0|0.0   ;;  %vm692_vm0 = vmmov 0   ;;  %v693_v6 = vmov 0.0   ;;  %vm44_vm1 = vcmask 261120   ;;  %s842_s3 = inlined_call_operand.vmem [shape: f32[32,32], index: 3, kind: input, shape index: {}]   ;;  %s843_s0 = inlined_call_operand.vmem [shape: f32[8,32], index: 0, kind: input, shape index: {}]   ;;  %s844_s1 = inlined_call_operand.vmem [shape: f32[8,32], index: 1, kind: input, shape index: {}]   ;;  %s845_s2 = inlined_call_operand.vmem [shape: f32[8,32], index: 2, kind: input, shape index: {}]   ;;  %s846_s6 = inlined_call_operand.vmem [shape: f32[32,128], index: 6, kind: input, shape index: {}]   ;;  %s847_s5 = inlined_call_operand.vmem [shape: f32[32,128], index: 5, kind: input, shape index: {}]   ;;  %s848_s4 = inlined_call_operand.vmem [shape: f32[1,32], index: 4, kind: input, shape index: {}]   ;;  %s849_s7 = inlined_call_operand.vmem [shape: f32[32,128], index: 7, kind: input, shape index: {}]   ;;  %s850_s8 = inlined_call_operand.vmem [shape: f32[1,128], index: 8, kind: input, shape index: {}]   ;;  %s851_s9 = inlined_call_operand.vmem [shape: f32[8,128], index: 9, kind: output, shape index: {}]  }
   0x1   :  { %639 = vmatprep.subr.bf16.mxu0 %v691_v0  ;;  %645 = vmatprep.subr.bf16.mxu1 %v691_v0  ;;  %v32_v1 = vld [vmem:[%s842_s3] sm:$0xff]  ;;  %v33_v2 = vld [vmem:[%s842_s3 + $0x8] sm:$0xff]  ;;  %v34_v3 = vld [vmem:[%s842_s3 + $0x10] sm:$0xff]  ;;  %v695_v52 = vmov 1   ;;  %v520_v59 = vlaneseq }
   0x2   :  { %v640_v4 = vpack.c.bf16 %v33_v2, %v32_v1  ;;  %v35_v5 = vld [vmem:[%s842_s3 + $0x18] sm:$0xff]  ;;  %581 = vmatprep.mubr.msk.f32.mxu0 %vm692_vm0, %v693_v6  ;;  %592 = vmatprep.mubr.msk.f32.mxu1 %vm692_vm0, %v693_v6  ;;  %v37_v8 = vld [vmem:[%s843_s0] sm:$0xff]  ;;  %v274_v12 = vld [vmem:[%s846_s6 + $0x8] sm:$0xff] }
   0x3   :  { %v643_v7 = vpack.c.bf16 %v35_v5, %v34_v3  ;;  %v119_v9 = vld [vmem:[%s844_s1] sm:$0xff]  ;;  %v270_v15 = vld [vmem:[%s847_s5 + $0x8] sm:$0xff]  ;;  %v275_v17 = vld [vmem:[%s846_s6 + $0x10] sm:$0xff]  ;;  %s694_s1 = smov 127   ;;  %680 = vset.pattern.permute.xlu0 %v695_v52  ;;  %v521_v60 = vand.u32 127, %v520_v59 }
   0x4   :  { %641 = vmatpush3.bf16.msra.mxu0 %v640_v4  ;;  %647 = vmatpush3.bf16.msra.mxu1 %v640_v4  ;;  %v194_v10 = vld [vmem:[%s845_s2] sm:$0xff]  ;;  %v276_v18 = vld [vmem:[%s846_s6 + $0x18] sm:$0xff]  ;;  %v271_v19 = vld [vmem:[%s847_s5 + $0x10] sm:$0xff] }
   0x5   :  { %642 = vmatprep.subr.bf16.mxu0 %v691_v0  ;;  %648 = vmatprep.subr.bf16.mxu1 %v691_v0  ;;  %v273_v11 = vld [vmem:[%s846_s6] sm:$0xff]  ;;  %v661_v20 = vpack.c.bf16 %v276_v18, %v275_v17  ;;  %v272_v21 = vld [vmem:[%s847_s5 + $0x18] sm:$0xff]  ;;  %v424_v34 = vld [vmem:[%s849_s7 + $0x8] sm:$0xff]  ;;  %vm522_vm2 = vcmp.eq.s32.totalorder %v521_v60, 0 }
   0x6   :  { %v269_v13 = vld [vmem:[%s847_s5] sm:$0xff]  ;;  %v658_v14 = vpack.c.bf16 %v274_v12, %v273_v11  ;;  %v667_v22 = vpack.c.bf16 %v272_v21, %v271_v19  ;;  %v425_v37 = vld [vmem:[%s849_s7 + $0x10] sm:$0xff]  ;;  %v426_v38 = vld [vmem:[%s849_s7 + $0x18] sm:$0xff] }
   0x7   :  { %v664_v16 = vpack.c.bf16 %v270_v15, %v269_v13  ;;  %v534_v23 = vld [vmem:[%s848_s4] ss:$0 sm:$0xff]  ;;  %v673_v40 = vpack.c.bf16 %v426_v38, %v425_v37 }
   0x8   :  { %644 = vmatpush3.bf16.msra.mxu0 %v643_v7  ;;  %650 = vmatpush3.bf16.msra.mxu1 %v643_v7  ;;  %v423_v33 = vld [vmem:[%s849_s7] sm:$0xff] }
   0x9   :  { %651 = vmatprep.subr.bf16.mxu0 %v691_v0  ;;  %657 = vmatprep.subr.bf16.mxu1 %v691_v0  ;;  %v670_v35 = vpack.c.bf16 %v424_v34, %v423_v33  ;;  %v541_v48 = vld [vmem:[%s850_s8] ss:$0 sm:$0xff] }
   0xb   :  { %582 = vmatmul.mubr.msk.f32.vlgmr.msra.gmra.mrb[0].mxu0 %vm44_vm1, %v37_v8  ;;  %593 = vmatmul.mubr.msk.f32.vlgmr.msra.gmra.mrb[0].mxu1 %vm44_vm1, %v119_v9 }
   0xc   :  { %653 = vmatpush3.bf16.msra.mxu0 %v640_v4  ;;  %603 = vmatprep.mubr.msk.f32.mxu0 %vm692_vm0, %v693_v6 }
   0xd   :  { %654 = vmatprep.subr.bf16.mxu0 %v691_v0  ;;  %614 = vmatprep.mubr.msk.f32.mxu1 %vm692_vm0, %v693_v6 }
   0xe   :  { %659 = vmatpush3.bf16.msra.mxu1 %v658_v14 }
   0xf   :  { %660 = vmatprep.subr.bf16.mxu1 %v691_v0 }
  0x10   :  { %656 = vmatpush3.bf16.msra.mxu0 %v643_v7 }
  0x11   :  { %663 = vmatprep.subr.bf16.mxu0 %v691_v0 }
  0x12   :  { %662 = vmatpush3.bf16.msra.mxu1 %v661_v20 }
  0x13   :  { %604 = vmatmul.mubr.msk.f32.vlgmr.msra.gmra.mrb[2].mxu0 %vm44_vm1, %v194_v10  ;;  %669 = vmatprep.subr.bf16.mxu1 %v691_v0 }
  0x14   :  { %625 = vmatprep.mubr.msk.f32.mxu0 %vm692_vm0, %v693_v6  ;;  %665 = vmatpush3.bf16.msra.mxu0 %v664_v16 }
  0x15   :  { %666 = vmatprep.subr.bf16.mxu0 %v691_v0 }
  0x18   :  { %668 = vmatpush3.bf16.msra.mxu0 %v667_v22 }
  0xde   :  { %v114_v24 = vpop.f32.mrb[0].mxu0  ;;  %v189_v25 = vpop.f32.mrb[0].mxu1 }
  0xdf   :  { %v115_v26 = vadd.f32 %v534_v23, %v114_v24  ;;  %v190_v27 = vadd.f32 %v534_v23, %v189_v25  ;;  %v583_v28 = vpop.f32.mrb[1].mxu0  ;;  %v594_v29 = vpop.f32.mrb[1].mxu1 }
  0xe1   :  { %681 = vtanh.f32 %v115_v26 }
  0xe2   :  { %683 = vtanh.f32 %v190_v27 }
  0xe6   :  { %v264_v30 = vpop.f32.mrb[2].mxu0 }
  0xe7   :  { %v265_v31 = vadd.f32 %v534_v23, %v264_v30  ;;  %v605_v32 = vpop.f32.mrb[3].mxu0 }
  0xe9   :  { %685 = vtanh.f32 %v265_v31 }
  0xeb   :  { %v682_v36 = vpop.eup %681 }
  0xec   :  { %v684_v39 = vpop.eup %683  ;;  %626 = vmatmul.mubr.msk.f32.vlgmr.msra.gmra.mrb[4].mxu0 %vm44_vm1, %v682_v36 }
  0xed   :  { %615 = vmatmul.mubr.msk.f32.vlgmr.msra.gmra.mrb[2].mxu1 %vm44_vm1, %v684_v39 }
  0xee   :  { %671 = vmatpush3.bf16.msra.mxu1 %v670_v35  ;;  %636 = vmatprep.mubr.msk.f32.mxu1 %vm692_vm0, %v693_v6 }
  0xef   :  { %672 = vmatprep.subr.bf16.mxu1 %v691_v0 }
  0xf2   :  { %674 = vmatpush3.bf16.msra.mxu1 %v673_v40 }
  0xf3   :  { %v686_v41 = vpop.eup %685 }
  0xf5   :  { %637 = vmatmul.mubr.msk.f32.vlgmr.msra.gmra.mrb[4].mxu1 %vm44_vm1, %v686_v41 }
 0x1bf   :  { %v419_v42 = vpop.f32.mrb[4].mxu0 }
 0x1c0   :  { %v346_v43 = vpop.f32.mrb[2].mxu1  ;;  %v627_v44 = vpop.f32.mrb[5].mxu0 }
 0x1c1   :  { %v420_v45 = vadd.f32 %v419_v42, %v346_v43  ;;  %v616_v46 = vpop.f32.mrb[3].mxu1 }
 0x1c8   :  { %v496_v47 = vpop.f32.mrb[4].mxu1 }
 0x1c9   :  { %v500_v49 = vadd.f32 %v496_v47, %v420_v45  ;;  %v638_v50 = vpop.f32.mrb[5].mxu1 }
 0x1cb   :  { %v508_v51 = vadd.f32 %v541_v48, %v500_v49 }
 0x1cd   :  { %510 = vrot.lane.b32.xlu0 %v508_v51, %s694_s1 }
 0x23f   :  { %v511_v53 = vpop.permute.xlu0 %510 }
 0x240   :  { %v513_v54 = vsub.f32 %v508_v51, %v511_v53 }
 0x242   :  { %v542_v55 = vmul.f32 -1.442695, %v513_v54 }
 0x244   :  { %687 = vpow2.f32 %v542_v55 }
 0x24e   :  { %v688_v56 = vpop.eup %687 }
 0x24f   :  { %v517_v57 = vadd.f32 1.0, %v688_v56 }
 0x251   :  { %689 = vrcp.f32 %v517_v57 }
 0x25b   :  { %v690_v58 = vpop.eup %689 }
 0x25c   :  { %525 = vperm.xlu0 %680, %v690_v58  }
 0x2db   :  { %v526_v61 = vpop.permute.xlu0 %525 }
 0x2dc   :  { %v528_v62 = vsel %vm522_vm2, %v526_v61, %v508_v51 }
 0x2dd   :  { %529 = vst [vmem:[%s851_s9] sm:$0xff] %v528_v62 }

</bundles_post_ra>
